<compile_context>
chip_gen: v5e
topology: v5e:2x2
jax: 0.10.0
libtpu: 0.0.40
codegen_flags: <defaults>
</compile_context>

<pallas_src>
import functools

import numpy as np
import jax
import jax.numpy as jnp
from jax.experimental import pallas as pl
from jax.experimental.pallas import tpu as pltpu

NEG_SLOPE = 0.01  # F.leaky_relu_ default


# ------------------------- Pallas kernel -------------------------

def _upsample_kernel(x_ref, wb_ref, b_ref, mw_ref, ldh_ref, o_ref):
    # x_ref  : (N*D*H, W*Cin)        stacked lane-dense input slab
    # wb_ref : (W*Cin, W*Cout)       block-diag conv weight  kron(I_W, Wconv)
    # b_ref  : (1, W*Cout)           bias tiled W times
    # mw_ref : (W*Cout, 2W*Cout)     kron(U_W^T, I_Cout)
    # ldh_ref: (N*2D*2H, N*D*H)      kron(I_N, kron(U_D, U_H))   (fused D+H)
    # o_ref  : (N*2D*2H, 2W*Cout)

    # 1x1x1 conv (pointwise over channels) + bias, as one lane-dense matmul.
    y = jnp.dot(x_ref[...], wb_ref[...],
                preferred_element_type=jnp.float32) + b_ref[...]

    # In-place leaky_relu (negative_slope = 0.01).
    y = jnp.where(y >= 0, y, NEG_SLOPE * y)

    # Trilinear upsample x2 (align_corners=False), separable as 2 matmuls:
    # right-multiply for W, single fused left-multiply for D and H.
    y = jnp.dot(y, mw_ref[...], preferred_element_type=jnp.float32)   # W
    y = jnp.dot(ldh_ref[...], y, preferred_element_type=jnp.float32)  # D & H

    o_ref[...] = y.astype(o_ref.dtype)


# ------------------------- host-side constant builders (cached) ----------

def _linear_upsample_matrix_np(in_size):
    """(2*in_size, in_size) matrix for 1-D linear upsample x2, align_corners=False.

    Matches PyTorch: src = max((o + 0.5) * 0.5 - 0.5, 0); i1 clamped to in_size-1.
    """
    out_size = 2 * in_size
    o = np.arange(out_size, dtype=np.float32)
    src = np.maximum((o + 0.5) * 0.5 - 0.5, 0.0)
    i0 = np.minimum(np.floor(src).astype(np.int32), in_size - 1)
    i1 = np.minimum(i0 + 1, in_size - 1)
    w1 = src - i0.astype(np.float32)
    w0 = 1.0 - w1
    u = np.zeros((out_size, in_size), np.float32)
    rows = np.arange(out_size)
    np.add.at(u, (rows, i0), w0)   # .add handles the i0 == i1 boundary case
    np.add.at(u, (rows, i1), w1)
    return u


@functools.lru_cache(maxsize=None)
def _build_constants(N, D, H, W, Cout):
    """Constant interpolation matrices; built once per shape, off the hot path."""
    u_w = _linear_upsample_matrix_np(W)                     # (2W, W)
    u_h = _linear_upsample_matrix_np(H)                     # (2H, H)
    u_d = _linear_upsample_matrix_np(D)                     # (2D, D)
    mw = np.kron(u_w.T, np.eye(Cout, dtype=np.float32))     # (W*Cout, 2W*Cout)
    ldh_blk = np.kron(u_d, u_h)                             # (2D*2H, D*H)
    ldh = np.kron(np.eye(N, dtype=np.float32), ldh_blk)     # (N*2D*2H, N*D*H)
    return jnp.asarray(mw), jnp.asarray(ldh)


# ------------------------- forward -------------------------

@jax.jit
def _upsample_jit(x, wmat, bias, mw, ldh):
    N, D, H, W, Cin = x.shape
    Cout = Cin // 2

    # Data-dependent (tiny) operands, built inside jit.
    wb = jnp.kron(jnp.eye(W, dtype=jnp.float32),
                  wmat.astype(jnp.float32))                          # (W*Cin, W*Cout)
    b_tile = jnp.tile(bias.astype(jnp.float32).reshape(1, Cout),
                      (1, W))                                        # (1, W*Cout)

    x2d = x.reshape(N * D * H, W * Cin)                              # lane-dense slab

    M_in, K_in, N_in = N * D * H, W * Cin, W * Cout
    M_out = N * 2 * D * 2 * H
    N_out = 2 * W * Cout

    flops = 2 * (M_in * K_in * N_in            # conv
                 + M_in * N_in * N_out         # W upsample
                 + M_out * M_in * N_out)       # fused D/H upsample
    bytes_accessed = 4 * (x2d.size + wb.size + b_tile.size
                          + mw.size + ldh.size + M_out * N_out)

    vmem = pltpu.MemorySpace.VMEM
    out2d = pl.pallas_call(
        _upsample_kernel,
        out_shape=jax.ShapeDtypeStruct((M_out, N_out), x.dtype),
        in_specs=[pl.BlockSpec(memory_space=vmem)] * 5,
        out_specs=pl.BlockSpec(memory_space=vmem),
        cost_estimate=pl.CostEstimate(flops=flops, transcendentals=0,
                                      bytes_accessed=bytes_accessed),
    )(x2d, wb, b_tile, mw, ldh)

    return out2d.reshape(N, 2 * D, 2 * H, 2 * W, Cout)


def upsample_forward(x, wmat, bias):
    """x: (N, D, H, W, Cin) f32.  wmat: (Cin, Cout) conv weight
    (PyTorch conv.weight[:, :, 0, 0, 0].T).  bias: (Cout,).
    Returns (N, 2D, 2H, 2W, Cout)."""
    N, D, H, W, Cin = x.shape
    mw, ldh = _build_constants(N, D, H, W, Cin // 2)
    return _upsample_jit(x, wmat, bias, mw, ldh)


# ------------------------- pure-JAX reference -------------------------

def _upsample1d_ref(x, axis):
    in_size = x.shape[axis]
    o = jnp.arange(2 * in_size, dtype=jnp.float32)
    src = jnp.maximum((o + 0.5) * 0.5 - 0.5, 0.0)
    i0 = jnp.minimum(jnp.floor(src).astype(jnp.int32), in_size - 1)
    i1 = jnp.minimum(i0 + 1, in_size - 1)
    w1 = src - i0.astype(jnp.float32)
    w0 = 1.0 - w1
    shape = [1] * x.ndim
    shape[axis] = 2 * in_size
    return (jnp.take(x, i0, axis=axis) * w0.reshape(shape)
            + jnp.take(x, i1, axis=axis) * w1.reshape(shape))


def upsample_forward_ref(x, wmat, bias):
    y = jnp.einsum('ndhwc,co->ndhwo', x, wmat) + bias.reshape(1, 1, 1, 1, -1)
    y = jnp.where(y >= 0, y, NEG_SLOPE * y)
    for axis in (1, 2, 3):   # D, H, W
        y = _upsample1d_ref(y, axis)
    return y


# ------------------------- main -------------------------

if __name__ == "__main__":
    N, D, H, W, Cin = 2, 8, 8, 8, 16
    Cout = Cin // 2

    key = jax.random.PRNGKey(0)
    k1, k2, k3 = jax.random.split(key, 3)

    x = jax.random.normal(k1, (N, D, H, W, Cin), jnp.float32)
    # PyTorch Conv3d(k=1) weight (Cout, Cin, 1, 1, 1) -> (Cin, Cout) matrix.
    w = 0.2 * jax.random.normal(k2, (Cin, Cout), jnp.float32)
    b = 0.1 * jax.random.normal(k3, (Cout,), jnp.float32)

    out = jax.block_until_ready(upsample_forward(x, w, b))
    ref = jax.block_until_ready(upsample_forward_ref(x, w, b))

    assert out.shape == (N, 2 * D, 2 * H, 2 * W, Cout) and out.dtype == x.dtype
    err = float(jnp.max(jnp.abs(out - ref)))
    assert err < 1e-4, f"max abs err = {err}"

    print("KERNEL_OK")
</pallas_src>

<mosaic_0001>
module attributes {stable_mosaic.version = 11 : i64} {
  func.func @_upsample_kernel(%arg0: memref<128x128xf32, #tpu.memory_space<vmem>>, %arg1: memref<128x64xf32, #tpu.memory_space<vmem>>, %arg2: memref<1x64xf32, #tpu.memory_space<vmem>>, %arg3: memref<64x128xf32, #tpu.memory_space<vmem>>, %arg4: memref<512x128xf32, #tpu.memory_space<vmem>>, %arg5: memref<512x128xf32, #tpu.memory_space<vmem>>) attributes {dimension_semantics = [], scalar_prefetch = 0 : i64, scratch_operands = 0 : i64, tpu.core_type = #tpu.core_type<tc>} {
    %c0 = arith.constant 0 : index
    %c0_0 = arith.constant 0 : index
    %0 = vector.load %arg0[%c0, %c0_0] : memref<128x128xf32, #tpu.memory_space<vmem>>, vector<128x128xf32>
    %c0_1 = arith.constant 0 : index
    %c0_2 = arith.constant 0 : index
    %1 = vector.load %arg1[%c0_1, %c0_2] : memref<128x64xf32, #tpu.memory_space<vmem>>, vector<128x64xf32>
    %cst = arith.constant dense<0.000000e+00> : vector<128x64xf32>
    %2 = tpu.matmul %0, %1, %cst {dimension_numbers = #tpu.dot_dimension_numbers<[1], [0], [0], [1], [0, 0, 1, 1], [], []>} : vector<128x128xf32>, vector<128x64xf32>, vector<128x64xf32> -> vector<128x64xf32>
    %c0_3 = arith.constant 0 : index
    %c0_4 = arith.constant 0 : index
    %3 = vector.load %arg2[%c0_3, %c0_4] : memref<1x64xf32, #tpu.memory_space<vmem>>, vector<1x64xf32>
    %4 = vector.broadcast %3 : vector<1x64xf32> to vector<128x64xf32>
    %5 = arith.addf %2, %4 : vector<128x64xf32>
    %cst_5 = arith.constant 0.000000e+00 : f32
    %6 = vector.broadcast %cst_5 : f32 to vector<128x64xf32>
    %7 = arith.cmpf oge, %5, %6 : vector<128x64xf32>
    %cst_6 = arith.constant 0.00999999977 : f32
    %8 = vector.broadcast %cst_6 : f32 to vector<128x64xf32>
    %9 = arith.mulf %8, %5 : vector<128x64xf32>
    %10 = arith.select %7, %5, %9 : vector<128x64xi1>, vector<128x64xf32>
    %c0_7 = arith.constant 0 : index
    %c0_8 = arith.constant 0 : index
    %11 = vector.load %arg3[%c0_7, %c0_8] : memref<64x128xf32, #tpu.memory_space<vmem>>, vector<64x128xf32>
    %cst_9 = arith.constant dense<0.000000e+00> : vector<128x128xf32>
    %12 = tpu.matmul %10, %11, %cst_9 {dimension_numbers = #tpu.dot_dimension_numbers<[1], [0], [0], [1], [0, 0, 1, 1], [], []>} : vector<128x64xf32>, vector<64x128xf32>, vector<128x128xf32> -> vector<128x128xf32>
    %c0_10 = arith.constant 0 : index
    %c0_11 = arith.constant 0 : index
    %13 = vector.load %arg4[%c0_10, %c0_11] : memref<512x128xf32, #tpu.memory_space<vmem>>, vector<512x128xf32>
    %cst_12 = arith.constant dense<0.000000e+00> : vector<512x128xf32>
    %14 = tpu.matmul %13, %12, %cst_12 {dimension_numbers = #tpu.dot_dimension_numbers<[1], [0], [0], [1], [0, 0, 1, 1], [], []>} : vector<512x128xf32>, vector<128x128xf32>, vector<512x128xf32> -> vector<512x128xf32>
    %c0_13 = arith.constant 0 : index
    %c0_14 = arith.constant 0 : index
    %15 = vector.load %arg5[%c0_13, %c0_14] : memref<512x128xf32, #tpu.memory_space<vmem>>, vector<512x128xf32>
    tpu.vector_store %arg5[%c0_13, %c0_14], %14 {strides = array<i32>} : memref<512x128xf32, #tpu.memory_space<vmem>>, vector<512x128xf32>,
    return
  }
}

</mosaic_0001>

<bundles_post_ra>
// kernel: _upsample_jit.1
= control target key start
LH: loop header
LB: loop body
LE: loop exit
PB: predicated region body
PF: predicated region fallthrough
CT: control target
= control target key end

     0   :  { %10 = vsyncpa [#allocation3], 0  ;;  %s1144_s0 = inlined_call_operand.vmem [shape: f32[128,128], index: 0, kind: input, shape index: {}]   ;;  %s1145_s1 = inlined_call_operand.vmem [shape: f32[128,64], index: 1, kind: input, shape index: {}]   ;;  %s1146_s2 = inlined_call_operand.vmem [shape: f32[1,64], index: 2, kind: input, shape index: {}]   ;;  %s1147_s3 = inlined_call_operand.hbm [shape: f32[64,128], index: 3, kind: input, shape index: {}]   ;;  %s1148_s4 = inlined_call_operand.hbm [shape: f32[512,128], index: 4, kind: input, shape index: {}]   ;;  %s1149_s5 = inlined_call_operand.vmem [shape: f32[512,128], index: 5, kind: output, shape index: {}]  }
   0x1   :  { %s22_s20 = sshll.u32 %s1147_s3, 4  ;;  %s23_s20 = int_to_ptr.hbm [resolvable:$true] %s22_s20 }
   0x2   :  { %11 = vsyncpa [#allocation5], 0  ;;  %s779_s21 = smov [#allocation2]   ;;  %s35_s25 = sshll.u32 %s1148_s4, 4  ;;  %s36_s25 = int_to_ptr.hbm [resolvable:$true] %s35_s25 }
   0x3   :  { %s24_s22 = sshll.u32 %s779_s21, 4  ;;  %s780_s26 = smov 128   ;;  %s25_s22 = int_to_ptr.vmem [resolvable:$true] %s24_s22 }
   0x4   :  { %s781_s27 = smov 8   ;;  %s782_s28 = smov [#allocation4]  }
   0x5   :  { %30 = dma.hbm_to_vmem [thread:$0]  %s23_s20, 1024, %s25_s22, [#allocation3], %s780_s26, %s780_s26, %s781_s27  }
   0x6   :  { %s37_s29 = sshll.u32 %s782_s28, 4  ;;  %s38_s29 = int_to_ptr.vmem [resolvable:$true] %s37_s29 }
   0x7   :  { %43 = dma.hbm_to_vmem [thread:$0]  %s36_s25, 8192, %s38_s29, [#allocation5], %s780_s26, %s780_s26, %s781_s27  }
   0x8   :  { %775 = dma.done.wait [#allocation3], 1024  }
   0x9   :  { %776 = vsyncadd [#allocation3], 4294966272 }
   0xa   :  { %777 = dma.done.wait [#allocation5], 8192  }
   0xb   :  { %778 = vsyncadd [#allocation5], 4294959104  ;;  %v83_v0 = vld [vmem:[%s1145_s1 + $0x78] sm:$0xff]  ;;  %v82_v1 = vld [vmem:[%s1145_s1 + $0x70] sm:$0xff]  ;;  %vm209_vm1 = vcmask 523264  }
   0xc   :  { %88 = vmatpush.msra.mxu0 %v83_v0  ;;  %v81_v2 = vld [vmem:[%s1145_s1 + $0x68] sm:$0xff]  ;;  %v80_v3 = vld [vmem:[%s1145_s1 + $0x60] sm:$0xff]  ;;  %v79_v4 = vld [vmem:[%s1145_s1 + $0x58] sm:$0xff] }
   0xd   :  { %v78_v5 = vld [vmem:[%s1145_s1 + $0x50] sm:$0xff]  ;;  %v77_v6 = vld [vmem:[%s1145_s1 + $0x48] sm:$0xff]  ;;  %v76_v7 = vld [vmem:[%s1145_s1 + $0x40] sm:$0xff] }
   0xe   :  { %89 = vmatpush.msra.mxu0 %v82_v1  ;;  %v75_v8 = vld [vmem:[%s1145_s1 + $0x38] sm:$0xff]  ;;  %v74_v9 = vld [vmem:[%s1145_s1 + $0x30] sm:$0xff]  ;;  %v73_v10 = vld [vmem:[%s1145_s1 + $0x28] sm:$0xff] }
   0xf   :  { %v72_v11 = vld [vmem:[%s1145_s1 + $0x20] sm:$0xff]  ;;  %v71_v12 = vld [vmem:[%s1145_s1 + $0x18] sm:$0xff]  ;;  %v70_v13 = vld [vmem:[%s1145_s1 + $0x10] sm:$0xff] }
  0x10   :  { %90 = vmatpush.msra.mxu0 %v81_v2  ;;  %v69_v14 = vld [vmem:[%s1145_s1 + $0x8] sm:$0xff]  ;;  %v68_v15 = vld [vmem:[%s1145_s1] sm:$0xff]  ;;  %v54_v18 = vld [vmem:[%s1144_s0 + $0x10] sm:$0xff] }
  0x11   :  { %v52_v16 = vld [vmem:[%s1144_s0] sm:$0xff]  ;;  %v53_v17 = vld [vmem:[%s1144_s0 + $0x8] sm:$0xff]  ;;  %v55_v19 = vld [vmem:[%s1144_s0 + $0x18] sm:$0xff] }
  0x12   :  { %91 = vmatpush.msra.mxu0 %v80_v3  ;;  %v56_v20 = vld [vmem:[%s1144_s0 + $0x20] sm:$0xff]  ;;  %v57_v21 = vld [vmem:[%s1144_s0 + $0x28] sm:$0xff]  ;;  %v58_v22 = vld [vmem:[%s1144_s0 + $0x30] sm:$0xff] }
  0x13   :  { %v59_v23 = vld [vmem:[%s1144_s0 + $0x38] sm:$0xff]  ;;  %v60_v24 = vld [vmem:[%s1144_s0 + $0x40] sm:$0xff]  ;;  %v61_v26 = vld [vmem:[%s1144_s0 + $0x48] sm:$0xff] }
  0x14   :  { %92 = vmatpush.msra.mxu0 %v79_v4  ;;  %v208_v25 = vld [vmem:[#allocation2 + $0x38] sm:$0xff]  ;;  %v62_v27 = vld [vmem:[%s1144_s0 + $0x50] sm:$0xff]  ;;  %v206_v30 = vld [vmem:[#allocation2 + $0x28] sm:$0xff] }
  0x15   :  { %682 = vmatpush.msra.mxu1 %v208_v25  ;;  %v207_v28 = vld [vmem:[#allocation2 + $0x30] sm:$0xff]  ;;  %v63_v29 = vld [vmem:[%s1144_s0 + $0x58] sm:$0xff]  ;;  %v205_v31 = vld [vmem:[#allocation2 + $0x20] sm:$0xff] }
  0x16   :  { %93 = vmatpush.msra.mxu0 %v78_v5  ;;  %v204_v32 = vld [vmem:[#allocation2 + $0x18] sm:$0xff]  ;;  %v64_v33 = vld [vmem:[%s1144_s0 + $0x60] sm:$0xff]  ;;  %v203_v34 = vld [vmem:[#allocation2 + $0x10] sm:$0xff] }
  0x17   :  { %683 = vmatpush.msra.mxu1 %v207_v28  ;;  %v202_v35 = vld [vmem:[#allocation2 + $0x8] sm:$0xff]  ;;  %v201_v36 = vld [vmem:[#allocation2] sm:$0xff]  ;;  %v66_v38 = vld [vmem:[%s1144_s0 + $0x70] sm:$0xff] }
  0x18   :  { %94 = vmatpush.msra.mxu0 %v77_v6  ;;  %v65_v37 = vld [vmem:[%s1144_s0 + $0x68] sm:$0xff]  ;;  %v67_v39 = vld [vmem:[%s1144_s0 + $0x78] sm:$0xff]  ;;  %v918_v40 = vld [vmem:[%s1146_s2] ss:$0 sm:$0xff] }
  0x19   :  { %684 = vmatpush.msra.mxu1 %v206_v30 }
  0x1a   :  { %95 = vmatpush.msra.mxu0 %v76_v7 }
  0x1b   :  { %685 = vmatpush.msra.mxu1 %v205_v31 }
  0x1c   :  { %96 = vmatpush.msra.mxu0 %v75_v8 }
  0x1d   :  { %686 = vmatpush.msra.mxu1 %v204_v32 }
  0x1e   :  { %97 = vmatpush.msra.mxu0 %v74_v9 }
  0x1f   :  { %687 = vmatpush.msra.mxu1 %v203_v34 }
  0x20   :  { %98 = vmatpush.msra.mxu0 %v73_v10 }
  0x21   :  { %688 = vmatpush.msra.mxu1 %v202_v35 }
  0x22   :  { %99 = vmatpush.msra.mxu0 %v72_v11 }
  0x23   :  { %689 = vmatpush.msra.mxu1 %v201_v36 }
  0x24   :  { %100 = vmatpush.msra.mxu0 %v71_v12 }
  0x26   :  { %101 = vmatpush.msra.mxu0 %v70_v13 }
  0x28   :  { %102 = vmatpush.msra.mxu0 %v69_v14 }
  0x2a   :  { %103 = vmatpush.msra.mxu0 %v68_v15 }
  0x2b   :  { %104 = vmatmul.f32.vlgmr.msra.gmra.mxu0 %v52_v16 }
  0x2c   :  { %266 = vmatpush.msrb.mxu0 %v208_v25 }
  0x2e   :  { %267 = vmatpush.msrb.mxu0 %v207_v28 }
  0x30   :  { %268 = vmatpush.msrb.mxu0 %v206_v30 }
  0x32   :  { %269 = vmatpush.msrb.mxu0 %v205_v31 }
  0x33   :  { %107 = vmatmul.f32.gmra.mxu0 %v53_v17 }
  0x34   :  { %270 = vmatpush.msrb.mxu0 %v204_v32 }
  0x36   :  { %271 = vmatpush.msrb.mxu0 %v203_v34 }
  0x38   :  { %272 = vmatpush.msrb.mxu0 %v202_v35 }
  0x3a   :  { %273 = vmatpush.msrb.mxu0 %v201_v36 }
  0x3b   :  { %110 = vmatmul.f32.gmra.mxu0 %v54_v18 }
  0x43   :  { %113 = vmatmul.f32.gmra.mxu0 %v55_v19 }
  0x4b   :  { %116 = vmatmul.f32.gmra.mxu0 %v56_v20 }
  0x53   :  { %119 = vmatmul.f32.gmra.mxu0 %v57_v21 }
  0x5b   :  { %122 = vmatmul.f32.gmra.mxu0 %v58_v22 }
  0x63   :  { %125 = vmatmul.f32.gmra.mxu0 %v59_v23 }
  0x6b   :  { %128 = vmatmul.f32.gmra.mxu0 %v60_v24 }
  0x73   :  { %131 = vmatmul.f32.gmra.mxu0 %v61_v26 }
  0x7b   :  { %134 = vmatmul.f32.gmra.mxu0 %v62_v27 }
  0x83   :  { %137 = vmatmul.f32.gmra.mxu0 %v63_v29 }
  0x8b   :  { %140 = vmatmul.f32.gmra.mxu0 %v64_v33 }
  0x93   :  { %143 = vmatmul.f32.gmra.mxu0 %v65_v37 }
  0x9b   :  { %146 = vmatmul.f32.gmra.mxu0 %v66_v38 }
  0xa3   :  { %149 = vmatmul.f32.gmra.mxu0 %v67_v39 }
  0xa8   :  { %v105_v41 = vpop.f32.mrf.mxu0 }
  0xa9   :  { %v106_v42 = vadd.f32 %v918_v40, %v105_v41 }
  0xab   :  { %vm153_vm0 = vcmp.ge.f32.partialorder %v106_v42, 0.0  ;;  %v169_v43 = vmul.f32 0.01, %v106_v42 }
  0xad   :  { %v185_v44 = vsel %vm153_vm0, %v106_v42, %v169_v43 }
  0xae   :  { %666 = vmatmul.msk.f32.vlgmr.msrb.gmra.mxu0 %vm209_vm1, %v185_v44 }
  0xb0   :  { %v108_v45 = vpop.f32.mrf.mxu0 }
  0xb1   :  { %v109_v46 = vadd.f32 %v918_v40, %v108_v45 }
  0xb3   :  { %v170_v47 = vmul.f32 0.01, %v109_v46  ;;  %vm154_vm2 = vcmp.ge.f32.partialorder %v109_v46, 0.0 }
  0xb5   :  { %v186_v48 = vsel %vm154_vm2, %v109_v46, %v170_v47 }
  0xb6   :  { %667 = vmatmul.msk.f32.gmra.mxu0 %vm209_vm1, %v186_v48 }
  0xb8   :  { %v111_v49 = vpop.f32.mrf.mxu0 }
  0xb9   :  { %v112_v50 = vadd.f32 %v918_v40, %v111_v49 }
  0xbb   :  { %v171_v51 = vmul.f32 0.01, %v112_v50  ;;  %vm155_vm3 = vcmp.ge.f32.partialorder %v112_v50, 0.0 }
  0xbd   :  { %v187_v52 = vsel %vm155_vm3, %v112_v50, %v171_v51 }
  0xbe   :  { %668 = vmatmul.msk.f32.gmra.mxu0 %vm209_vm1, %v187_v52 }
  0xc0   :  { %v114_v53 = vpop.f32.mrf.mxu0 }
  0xc1   :  { %v115_v54 = vadd.f32 %v918_v40, %v114_v53 }
  0xc3   :  { %v172_v55 = vmul.f32 0.01, %v115_v54  ;;  %vm156_vm4 = vcmp.ge.f32.partialorder %v115_v54, 0.0 }
  0xc5   :  { %v188_v56 = vsel %vm156_vm4, %v115_v54, %v172_v55 }
  0xc6   :  { %669 = vmatmul.msk.f32.gmra.mxu0 %vm209_vm1, %v188_v56 }
  0xc8   :  { %v117_v57 = vpop.f32.mrf.mxu0 }
  0xc9   :  { %v118_v58 = vadd.f32 %v918_v40, %v117_v57  ;;  %v339_v57 = vld [vmem:[#allocation4 + $0x80] sm:$0xff] }
  0xcb   :  { %v173_v59 = vmul.f32 0.01, %v118_v58  ;;  %vm157_vm5 = vcmp.ge.f32.partialorder %v118_v58, 0.0 }
  0xcd   :  { %v189_v60 = vsel %vm157_vm5, %v118_v58, %v173_v59  ;;  %v363_v58 = vld [vmem:[#allocation4 + $0x140] sm:$0xff]  ;;  %v340_v59 = vld [vmem:[#allocation4 + $0x88] sm:$0xff] }
  0xce   :  { %670 = vmatmul.msk.f32.gmra.mxu0 %vm209_vm1, %v189_v60  ;;  %v364_v60 = vld [vmem:[#allocation4 + $0x148] sm:$0xff] }
  0xd0   :  { %v120_v61 = vpop.f32.mrf.mxu0 }
  0xd1   :  { %v121_v62 = vadd.f32 %v918_v40, %v120_v61  ;;  %v341_v61 = vld [vmem:[#allocation4 + $0x90] sm:$0xff] }
  0xd3   :  { %v174_v63 = vmul.f32 0.01, %v121_v62  ;;  %vm158_vm6 = vcmp.ge.f32.partialorder %v121_v62, 0.0 }
  0xd5   :  { %v190_v0 = vsel %vm158_vm6, %v121_v62, %v174_v63  ;;  %v365_v62 = vld [vmem:[#allocation4 + $0x150] sm:$0xff]  ;;  %v342_v63 = vld [vmem:[#allocation4 + $0x98] sm:$0xff] }
  0xd6   :  { %671 = vmatmul.msk.f32.gmra.mxu0 %vm209_vm1, %v190_v0  ;;  %v366_v0 = vld [vmem:[#allocation4 + $0x158] sm:$0xff] }
  0xd8   :  { %v123_v1 = vpop.f32.mrf.mxu0 }
  0xd9   :  { %v124_v2 = vadd.f32 %v918_v40, %v123_v1  ;;  %v343_v1 = vld [vmem:[#allocation4 + $0xa0] sm:$0xff] }
  0xdb   :  { %v175_v3 = vmul.f32 0.01, %v124_v2  ;;  %vm159_vm7 = vcmp.ge.f32.partialorder %v124_v2, 0.0 }
  0xdd   :  { %v191_v4 = vsel %vm159_vm7, %v124_v2, %v175_v3  ;;  %v367_v2 = vld [vmem:[#allocation4 + $0x160] sm:$0xff] }
  0xde   :  { %672 = vmatmul.msk.f32.vlgmr.msra.gmra.mxu1 %vm209_vm1, %v191_v4  ;;  %v323_v3 = vld [vmem:[#allocation4] sm:$0xff]  ;;  %v344_v4 = vld [vmem:[#allocation4 + $0xa8] sm:$0xff] }
  0xe0   :  { %v126_v5 = vpop.f32.mrf.mxu0 }
  0xe1   :  { %v127_v6 = vadd.f32 %v918_v40, %v126_v5  ;;  %v368_v5 = vld [vmem:[#allocation4 + $0x168] sm:$0xff] }
  0xe3   :  { %v176_v7 = vmul.f32 0.01, %v127_v6  ;;  %vm160_vm8 = vcmp.ge.f32.partialorder %v127_v6, 0.0 }
  0xe5   :  { %v192_v8 = vsel %vm160_vm8, %v127_v6, %v176_v7  ;;  %v324_v6 = vld [vmem:[#allocation4 + $0x8] sm:$0xff]  ;;  %v345_v7 = vld [vmem:[#allocation4 + $0xb0] sm:$0xff] }
  0xe6   :  { %673 = vmatmul.msk.f32.gmra.mxu1 %vm209_vm1, %v192_v8  ;;  %v369_v8 = vld [vmem:[#allocation4 + $0x170] sm:$0xff] }
  0xe8   :  { %v129_v9 = vpop.f32.mrf.mxu0 }
  0xe9   :  { %v130_v10 = vadd.f32 %v918_v40, %v129_v9  ;;  %v325_v9 = vld [vmem:[#allocation4 + $0x10] sm:$0xff] }
  0xeb   :  { %v177_v11 = vmul.f32 0.01, %v130_v10  ;;  %vm161_vm9 = vcmp.ge.f32.partialorder %v130_v10, 0.0 }
  0xed   :  { %v193_v12 = vsel %vm161_vm9, %v130_v10, %v177_v11  ;;  %v346_v10 = vld [vmem:[#allocation4 + $0xb8] sm:$0xff] }
  0xee   :  { %674 = vmatmul.msk.f32.gmra.mxu1 %vm209_vm1, %v193_v12  ;;  %v370_v11 = vld [vmem:[#allocation4 + $0x178] sm:$0xff] }
  0xef   :  { %v326_v12 = vld [vmem:[#allocation4 + $0x18] sm:$0xff] }
  0xf0   :  { %v132_v13 = vpop.f32.mrf.mxu0 }
  0xf1   :  { %v133_v14 = vadd.f32 %v918_v40, %v132_v13  ;;  %v347_v13 = vld [vmem:[#allocation4 + $0xc0] sm:$0xff] }
  0xf3   :  { %v178_v15 = vmul.f32 0.01, %v133_v14  ;;  %vm162_vm10 = vcmp.ge.f32.partialorder %v133_v14, 0.0 }
  0xf5   :  { %v194_v16 = vsel %vm162_vm10, %v133_v14, %v178_v15  ;;  %v371_v14 = vld [vmem:[#allocation4 + $0x180] sm:$0xff] }
  0xf6   :  { %675 = vmatmul.msk.f32.gmra.mxu1 %vm209_vm1, %v194_v16  ;;  %v327_v15 = vld [vmem:[#allocation4 + $0x20] sm:$0xff]  ;;  %v348_v16 = vld [vmem:[#allocation4 + $0xc8] sm:$0xff] }
  0xf8   :  { %v135_v17 = vpop.f32.mrf.mxu0 }
  0xf9   :  { %v136_v18 = vadd.f32 %v918_v40, %v135_v17  ;;  %v372_v17 = vld [vmem:[#allocation4 + $0x188] sm:$0xff] }
  0xfb   :  { %v179_v19 = vmul.f32 0.01, %v136_v18  ;;  %vm163_vm11 = vcmp.ge.f32.partialorder %v136_v18, 0.0 }
  0xfd   :  { %v195_v20 = vsel %vm163_vm11, %v136_v18, %v179_v19  ;;  %v328_v18 = vld [vmem:[#allocation4 + $0x28] sm:$0xff]  ;;  %v349_v19 = vld [vmem:[#allocation4 + $0xd0] sm:$0xff] }
  0xfe   :  { %676 = vmatmul.msk.f32.gmra.mxu1 %vm209_vm1, %v195_v20  ;;  %v373_v20 = vld [vmem:[#allocation4 + $0x190] sm:$0xff] }
 0x100   :  { %v138_v21 = vpop.f32.mrf.mxu0 }
 0x101   :  { %v139_v22 = vadd.f32 %v918_v40, %v138_v21  ;;  %v329_v21 = vld [vmem:[#allocation4 + $0x30] sm:$0xff] }
 0x103   :  { %v180_v23 = vmul.f32 0.01, %v139_v22  ;;  %vm164_vm12 = vcmp.ge.f32.partialorder %v139_v22, 0.0 }
 0x105   :  { %v196_v24 = vsel %vm164_vm12, %v139_v22, %v180_v23  ;;  %v350_v22 = vld [vmem:[#allocation4 + $0xd8] sm:$0xff] }
 0x106   :  { %677 = vmatmul.msk.f32.gmra.mxu1 %vm209_vm1, %v196_v24  ;;  %v374_v23 = vld [vmem:[#allocation4 + $0x198] sm:$0xff] }
 0x107   :  { %v330_v24 = vld [vmem:[#allocation4 + $0x38] sm:$0xff] }
 0x108   :  { %v141_v25 = vpop.f32.mrf.mxu0 }
 0x109   :  { %v142_v26 = vadd.f32 %v918_v40, %v141_v25  ;;  %v351_v25 = vld [vmem:[#allocation4 + $0xe0] sm:$0xff] }
 0x10b   :  { %v181_v27 = vmul.f32 0.01, %v142_v26  ;;  %vm165_vm13 = vcmp.ge.f32.partialorder %v142_v26, 0.0 }
 0x10d   :  { %v197_v28 = vsel %vm165_vm13, %v142_v26, %v181_v27  ;;  %v375_v26 = vld [vmem:[#allocation4 + $0x1a0] sm:$0xff]  ;;  %v352_v27 = vld [vmem:[#allocation4 + $0xe8] sm:$0xff] }
 0x10e   :  { %678 = vmatmul.msk.f32.gmra.mxu1 %vm209_vm1, %v197_v28  ;;  %v331_v28 = vld [vmem:[#allocation4 + $0x40] sm:$0xff] }
 0x110   :  { %v144_v29 = vpop.f32.mrf.mxu0 }
 0x111   :  { %v145_v30 = vadd.f32 %v918_v40, %v144_v29  ;;  %v376_v29 = vld [vmem:[#allocation4 + $0x1a8] sm:$0xff] }
 0x113   :  { %v182_v31 = vmul.f32 0.01, %v145_v30  ;;  %vm166_vm14 = vcmp.ge.f32.partialorder %v145_v30, 0.0 }
 0x115   :  { %v198_v32 = vsel %vm166_vm14, %v145_v30, %v182_v31  ;;  %v353_v30 = vld [vmem:[#allocation4 + $0xf0] sm:$0xff]  ;;  %v332_v31 = vld [vmem:[#allocation4 + $0x48] sm:$0xff] }
 0x116   :  { %679 = vmatmul.msk.f32.gmra.mxu1 %vm209_vm1, %v198_v32  ;;  %v377_v32 = vld [vmem:[#allocation4 + $0x1b0] sm:$0xff] }
 0x118   :  { %v147_v33 = vpop.f32.mrf.mxu0 }
 0x119   :  { %v148_v34 = vadd.f32 %v918_v40, %v147_v33  ;;  %v354_v33 = vld [vmem:[#allocation4 + $0xf8] sm:$0xff] }
 0x11b   :  { %v183_v35 = vmul.f32 0.01, %v148_v34  ;;  %vm167_vm15 = vcmp.ge.f32.partialorder %v148_v34, 0.0 }
 0x11d   :  { %v199_v36 = vsel %vm167_vm15, %v148_v34, %v183_v35  ;;  %v333_v34 = vld [vmem:[#allocation4 + $0x50] sm:$0xff]  ;;  %v378_v35 = vld [vmem:[#allocation4 + $0x1b8] sm:$0xff] }
 0x11e   :  { %680 = vmatmul.msk.f32.gmra.mxu1 %vm209_vm1, %v199_v36  ;;  %v355_v36 = vld [vmem:[#allocation4 + $0x100] sm:$0xff] }
 0x120   :  { %v150_v37 = vpop.f32.mrf.mxu0 }
 0x121   :  { %v151_v38 = vadd.f32 %v918_v40, %v150_v37  ;;  %v334_v37 = vld [vmem:[#allocation4 + $0x58] sm:$0xff] }
 0x123   :  { %v184_v39 = vmul.f32 0.01, %v151_v38  ;;  %vm168_vm0 = vcmp.ge.f32.partialorder %v151_v38, 0.0 }
 0x125   :  { %v200_v41 = vsel %vm168_vm0, %v151_v38, %v184_v39  ;;  %v379_v38 = vld [vmem:[#allocation4 + $0x1c0] sm:$0xff] }
 0x126   :  { %681 = vmatmul.msk.f32.gmra.mxu1 %vm209_vm1, %v200_v41 }
 0x12b   :  { %v275_v48 = vpop.f32.mrf.mxu0 }
 0x133   :  { %v278_v50 = vpop.f32.mrf.mxu0 }
 0x13b   :  { %v281_v52 = vpop.f32.mrf.mxu0 }
 0x143   :  { %v284_v54 = vpop.f32.mrf.mxu0 }
 0x14b   :  { %v287_v40 = vpop.f32.mrf.mxu0 }
 0x153   :  { %v290_v56 = vpop.f32.mrf.mxu0 }
 0x15b   :  { %v293_v42 = vpop.f32.mrf.mxu1 }
 0x163   :  { %v296_v43 = vpop.f32.mrf.mxu1 }
 0x16b   :  { %v299_v44 = vpop.f32.mrf.mxu1 }
 0x173   :  { %v302_v45 = vpop.f32.mrf.mxu1 }
 0x17b   :  { %v305_v46 = vpop.f32.mrf.mxu1 }
 0x183   :  { %v308_v47 = vpop.f32.mrf.mxu1 }
 0x18b   :  { %v311_v49 = vpop.f32.mrf.mxu1 }
 0x193   :  { %v314_v51 = vpop.f32.mrf.mxu1 }
 0x19b   :  { %v317_v53 = vpop.f32.mrf.mxu1 }
 0x1a3   :  { %v320_v55 = vpop.f32.mrf.mxu1 }
 0x1a4   :  { %387 = vmatpush.msrb.mxu1 %v320_v55  ;;  %690 = vmatpush.msra.mxu2 %v320_v55 }
 0x1a5   :  { %691 = vmatpush.msra.mxu3 %v320_v55 }
 0x1a6   :  { %388 = vmatpush.msrb.mxu1 %v317_v53  ;;  %692 = vmatpush.msra.mxu2 %v317_v53 }
 0x1a7   :  { %693 = vmatpush.msra.mxu3 %v317_v53  ;;  %v337_v53 = vld [vmem:[#allocation4 + $0x70] sm:$0xff] }
 0x1a8   :  { %389 = vmatpush.msrb.mxu1 %v314_v51  ;;  %694 = vmatpush.msra.mxu2 %v314_v51 }
 0x1a9   :  { %695 = vmatpush.msra.mxu3 %v314_v51 }
 0x1aa   :  { %390 = vmatpush.msrb.mxu1 %v311_v49  ;;  %696 = vmatpush.msra.mxu2 %v311_v49 }
 0x1ab   :  { %697 = vmatpush.msra.mxu3 %v311_v49  ;;  %v381_v49 = vld [vmem:[#allocation4 + $0x1d0] sm:$0xff] }
 0x1ac   :  { %391 = vmatpush.msrb.mxu1 %v308_v47  ;;  %698 = vmatpush.msra.mxu2 %v308_v47 }
 0x1ad   :  { %699 = vmatpush.msra.mxu3 %v308_v47  ;;  %v357_v47 = vld [vmem:[#allocation4 + $0x110] sm:$0xff] }
 0x1ae   :  { %392 = vmatpush.msrb.mxu1 %v305_v46  ;;  %700 = vmatpush.msra.mxu2 %v305_v46 }
 0x1af   :  { %701 = vmatpush.msra.mxu3 %v305_v46 }
 0x1b0   :  { %393 = vmatpush.msrb.mxu1 %v302_v45  ;;  %702 = vmatpush.msra.mxu2 %v302_v45 }
 0x1b1   :  { %703 = vmatpush.msra.mxu3 %v302_v45 }
 0x1b2   :  { %394 = vmatpush.msrb.mxu1 %v299_v44  ;;  %704 = vmatpush.msra.mxu2 %v299_v44 }
 0x1b3   :  { %705 = vmatpush.msra.mxu3 %v299_v44  ;;  %v380_v44 = vld [vmem:[#allocation4 + $0x1c8] sm:$0xff] }
 0x1b4   :  { %395 = vmatpush.msrb.mxu1 %v296_v43  ;;  %706 = vmatpush.msra.mxu2 %v296_v43 }
 0x1b5   :  { %707 = vmatpush.msra.mxu3 %v296_v43  ;;  %v335_v43 = vld [vmem:[#allocation4 + $0x60] sm:$0xff] }
 0x1b6   :  { %396 = vmatpush.msrb.mxu1 %v293_v42  ;;  %708 = vmatpush.msra.mxu2 %v293_v42 }
 0x1b7   :  { %709 = vmatpush.msra.mxu3 %v293_v42  ;;  %v356_v42 = vld [vmem:[#allocation4 + $0x108] sm:$0xff] }
 0x1b8   :  { %397 = vmatpush.msrb.mxu1 %v290_v56  ;;  %710 = vmatpush.msra.mxu2 %v290_v56 }
 0x1b9   :  { %711 = vmatpush.msra.mxu3 %v290_v56  ;;  %v359_v56 = vld [vmem:[#allocation4 + $0x120] sm:$0xff] }
 0x1ba   :  { %398 = vmatpush.msrb.mxu1 %v287_v40  ;;  %712 = vmatpush.msra.mxu2 %v287_v40 }
 0x1bb   :  { %713 = vmatpush.msra.mxu3 %v287_v40 }
 0x1bc   :  { %399 = vmatpush.msrb.mxu1 %v284_v54  ;;  %714 = vmatpush.msra.mxu2 %v284_v54 }
 0x1bd   :  { %715 = vmatpush.msra.mxu3 %v284_v54  ;;  %v382_v54 = vld [vmem:[#allocation4 + $0x1d8] sm:$0xff] }
 0x1be   :  { %400 = vmatpush.msrb.mxu1 %v281_v52  ;;  %716 = vmatpush.msra.mxu2 %v281_v52 }
 0x1bf   :  { %717 = vmatpush.msra.mxu3 %v281_v52  ;;  %v358_v52 = vld [vmem:[#allocation4 + $0x118] sm:$0xff] }
 0x1c0   :  { %401 = vmatpush.msrb.mxu1 %v278_v50  ;;  %718 = vmatpush.msra.mxu2 %v278_v50 }
 0x1c1   :  { %719 = vmatpush.msra.mxu3 %v278_v50 }
 0x1c2   :  { %402 = vmatpush.msrb.mxu1 %v275_v48  ;;  %720 = vmatpush.msra.mxu2 %v275_v48 }
 0x1c3   :  { %721 = vmatpush.msra.mxu3 %v275_v48  ;;  %451 = vmatmul.f32.vlgmr.msra.gmra.mxu2 %v339_v57  ;;  %v336_v48 = vld [vmem:[#allocation4 + $0x68] sm:$0xff]  ;;  %v338_v57 = vld [vmem:[#allocation4 + $0x78] sm:$0xff] }
 0x1c4   :  { %523 = vmatmul.f32.vlgmr.msra.gmra.mxu3 %v363_v58  ;;  %403 = vmatmul.f32.vlgmr.msrb.gmra.mxu1 %v323_v3  ;;  %v383_v58 = vld [vmem:[#allocation4 + $0x1e0] sm:$0xff]  ;;  %v361_v3 = vld [vmem:[#allocation4 + $0x130] sm:$0xff] }
 0x1cb   :  { %454 = vmatmul.f32.gmra.mxu2 %v340_v59 }
 0x1cc   :  { %526 = vmatmul.f32.gmra.mxu3 %v364_v60  ;;  %406 = vmatmul.f32.gmra.mxu1 %v324_v6 }
 0x1d3   :  { %457 = vmatmul.f32.gmra.mxu2 %v341_v61 }
 0x1d4   :  { %529 = vmatmul.f32.gmra.mxu3 %v365_v62  ;;  %409 = vmatmul.f32.gmra.mxu1 %v325_v9  ;;  %v360_v62 = vld [vmem:[#allocation4 + $0x128] sm:$0xff]  ;;  %v386_v9 = vld [vmem:[#allocation4 + $0x1f8] sm:$0xff] }
 0x1db   :  { %460 = vmatmul.f32.gmra.mxu2 %v342_v63  ;;  %v384_v63 = vld [vmem:[#allocation4 + $0x1e8] sm:$0xff] }
 0x1dc   :  { %532 = vmatmul.f32.gmra.mxu3 %v366_v0  ;;  %412 = vmatmul.f32.gmra.mxu1 %v326_v12 }
 0x1e3   :  { %463 = vmatmul.f32.gmra.mxu2 %v343_v1 }
 0x1e4   :  { %535 = vmatmul.f32.gmra.mxu3 %v367_v2  ;;  %415 = vmatmul.f32.gmra.mxu1 %v327_v15 }
 0x1eb   :  { %466 = vmatmul.f32.gmra.mxu2 %v344_v4  ;;  %v385_v4 = vld [vmem:[#allocation4 + $0x1f0] sm:$0xff] }
 0x1ec   :  { %538 = vmatmul.f32.gmra.mxu3 %v368_v5  ;;  %418 = vmatmul.f32.gmra.mxu1 %v328_v18 }
 0x1f3   :  { %469 = vmatmul.f32.gmra.mxu2 %v345_v7 }
 0x1f4   :  { %541 = vmatmul.f32.gmra.mxu3 %v369_v8  ;;  %421 = vmatmul.f32.gmra.mxu1 %v329_v21  ;;  %v362_v8 = vld [vmem:[#allocation4 + $0x138] sm:$0xff] }
 0x1fb   :  { %472 = vmatmul.f32.gmra.mxu2 %v346_v10 }
 0x1fc   :  { %544 = vmatmul.f32.gmra.mxu3 %v370_v11  ;;  %424 = vmatmul.f32.gmra.mxu1 %v330_v24 }
 0x203   :  { %475 = vmatmul.f32.gmra.mxu2 %v347_v13 }
 0x204   :  { %547 = vmatmul.f32.gmra.mxu3 %v371_v14  ;;  %427 = vmatmul.f32.gmra.mxu1 %v331_v28 }
 0x20b   :  { %478 = vmatmul.f32.gmra.mxu2 %v348_v16 }
 0x20c   :  { %550 = vmatmul.f32.gmra.mxu3 %v372_v17  ;;  %430 = vmatmul.f32.gmra.mxu1 %v332_v31 }
 0x213   :  { %481 = vmatmul.f32.gmra.mxu2 %v349_v19 }
 0x214   :  { %553 = vmatmul.f32.gmra.mxu3 %v373_v20  ;;  %433 = vmatmul.f32.gmra.mxu1 %v333_v34 }
 0x21b   :  { %484 = vmatmul.f32.gmra.mxu2 %v350_v22 }
 0x21c   :  { %556 = vmatmul.f32.gmra.mxu3 %v374_v23  ;;  %436 = vmatmul.f32.gmra.mxu1 %v334_v37 }
 0x223   :  { %487 = vmatmul.f32.gmra.mxu2 %v351_v25 }
 0x224   :  { %559 = vmatmul.f32.gmra.mxu3 %v375_v26  ;;  %439 = vmatmul.f32.gmra.mxu1 %v335_v43 }
 0x22b   :  { %490 = vmatmul.f32.gmra.mxu2 %v352_v27 }
 0x22c   :  { %562 = vmatmul.f32.gmra.mxu3 %v376_v29  ;;  %442 = vmatmul.f32.gmra.mxu1 %v336_v48 }
 0x233   :  { %493 = vmatmul.f32.gmra.mxu2 %v353_v30 }
 0x234   :  { %565 = vmatmul.f32.gmra.mxu3 %v377_v32  ;;  %445 = vmatmul.f32.gmra.mxu1 %v337_v53 }
 0x23b   :  { %496 = vmatmul.f32.gmra.mxu2 %v354_v33 }
 0x23c   :  { %568 = vmatmul.f32.gmra.mxu3 %v378_v35  ;;  %448 = vmatmul.f32.gmra.mxu1 %v338_v57 }
 0x241   :  { %v404_v59 = vpop.f32.mrf.mxu1 }
 0x242   :  { %596 = vst [vmem:[%s1149_s5] sm:$0xff] %v404_v59 }
 0x243   :  { %499 = vmatmul.f32.gmra.mxu2 %v355_v36 }
 0x244   :  { %571 = vmatmul.f32.gmra.mxu3 %v379_v38 }
 0x246   :  { %v452_v39 = vpop.f32.mrf.mxu2 }
 0x247   :  { %612 = vst [vmem:[%s1149_s5 + $0x80] sm:$0xff] %v452_v39  ;;  %v524_v41 = vpop.f32.mrf.mxu3 }
 0x248   :  { %636 = vst [vmem:[%s1149_s5 + $0x140] sm:$0xff] %v524_v41 }
 0x249   :  { %v407_v0 = vpop.f32.mrf.mxu1 }
 0x24a   :  { %597 = vst [vmem:[%s1149_s5 + $0x8] sm:$0xff] %v407_v0 }
 0x24b   :  { %502 = vmatmul.f32.gmra.mxu2 %v356_v42 }
 0x24c   :  { %574 = vmatmul.f32.gmra.mxu3 %v380_v44 }
 0x24e   :  { %v455_v45 = vpop.f32.mrf.mxu2 }
 0x24f   :  { %613 = vst [vmem:[%s1149_s5 + $0x88] sm:$0xff] %v455_v45  ;;  %v527_v46 = vpop.f32.mrf.mxu3 }
 0x250   :  { %637 = vst [vmem:[%s1149_s5 + $0x148] sm:$0xff] %v527_v46 }
 0x251   :  { %v410_v5 = vpop.f32.mrf.mxu1 }
 0x252   :  { %598 = vst [vmem:[%s1149_s5 + $0x10] sm:$0xff] %v410_v5 }
 0x253   :  { %505 = vmatmul.f32.gmra.mxu2 %v357_v47 }
 0x254   :  { %577 = vmatmul.f32.gmra.mxu3 %v381_v49 }
 0x256   :  { %v458_v50 = vpop.f32.mrf.mxu2 }
 0x257   :  { %614 = vst [vmem:[%s1149_s5 + $0x90] sm:$0xff] %v458_v50  ;;  %v530_v51 = vpop.f32.mrf.mxu3 }
 0x258   :  { %638 = vst [vmem:[%s1149_s5 + $0x150] sm:$0xff] %v530_v51 }
 0x259   :  { %v413_v10 = vpop.f32.mrf.mxu1 }
 0x25a   :  { %599 = vst [vmem:[%s1149_s5 + $0x18] sm:$0xff] %v413_v10 }
 0x25b   :  { %508 = vmatmul.f32.gmra.mxu2 %v358_v52 }
 0x25c   :  { %580 = vmatmul.f32.gmra.mxu3 %v382_v54 }
 0x25e   :  { %v461_v55 = vpop.f32.mrf.mxu2 }
 0x25f   :  { %615 = vst [vmem:[%s1149_s5 + $0x98] sm:$0xff] %v461_v55  ;;  %v533_v40 = vpop.f32.mrf.mxu3 }
 0x260   :  { %639 = vst [vmem:[%s1149_s5 + $0x158] sm:$0xff] %v533_v40 }
 0x261   :  { %v416_v13 = vpop.f32.mrf.mxu1 }
 0x262   :  { %600 = vst [vmem:[%s1149_s5 + $0x20] sm:$0xff] %v416_v13 }
 0x263   :  { %511 = vmatmul.f32.gmra.mxu2 %v359_v56 }
 0x264   :  { %583 = vmatmul.f32.gmra.mxu3 %v383_v58 }
 0x266   :  { %v464_v60 = vpop.f32.mrf.mxu2 }
 0x267   :  { %616 = vst [vmem:[%s1149_s5 + $0xa0] sm:$0xff] %v464_v60  ;;  %v536_v61 = vpop.f32.mrf.mxu3 }
 0x268   :  { %640 = vst [vmem:[%s1149_s5 + $0x160] sm:$0xff] %v536_v61 }
 0x269   :  { %v419_v16 = vpop.f32.mrf.mxu1 }
 0x26a   :  { %601 = vst [vmem:[%s1149_s5 + $0x28] sm:$0xff] %v419_v16 }
 0x26b   :  { %514 = vmatmul.f32.gmra.mxu2 %v360_v62 }
 0x26c   :  { %586 = vmatmul.f32.gmra.mxu3 %v384_v63 }
 0x26e   :  { %v467_v1 = vpop.f32.mrf.mxu2 }
 0x26f   :  { %617 = vst [vmem:[%s1149_s5 + $0xa8] sm:$0xff] %v467_v1  ;;  %v539_v2 = vpop.f32.mrf.mxu3 }
 0x270   :  { %641 = vst [vmem:[%s1149_s5 + $0x168] sm:$0xff] %v539_v2 }
 0x271   :  { %v422_v19 = vpop.f32.mrf.mxu1 }
 0x272   :  { %602 = vst [vmem:[%s1149_s5 + $0x30] sm:$0xff] %v422_v19 }
 0x273   :  { %517 = vmatmul.f32.gmra.mxu2 %v361_v3 }
 0x274   :  { %589 = vmatmul.f32.gmra.mxu3 %v385_v4 }
 0x276   :  { %v470_v6 = vpop.f32.mrf.mxu2 }
 0x277   :  { %618 = vst [vmem:[%s1149_s5 + $0xb0] sm:$0xff] %v470_v6  ;;  %v542_v7 = vpop.f32.mrf.mxu3 }
 0x278   :  { %642 = vst [vmem:[%s1149_s5 + $0x170] sm:$0xff] %v542_v7 }
 0x279   :  { %v425_v22 = vpop.f32.mrf.mxu1 }
 0x27a   :  { %603 = vst [vmem:[%s1149_s5 + $0x38] sm:$0xff] %v425_v22 }
 0x27b   :  { %520 = vmatmul.f32.gmra.mxu2 %v362_v8 }
 0x27c   :  { %592 = vmatmul.f32.gmra.mxu3 %v386_v9 }
 0x27e   :  { %v473_v11 = vpop.f32.mrf.mxu2 }
 0x27f   :  { %619 = vst [vmem:[%s1149_s5 + $0xb8] sm:$0xff] %v473_v11  ;;  %v545_v12 = vpop.f32.mrf.mxu3 }
 0x280   :  { %643 = vst [vmem:[%s1149_s5 + $0x178] sm:$0xff] %v545_v12 }
 0x281   :  { %v428_v26 = vpop.f32.mrf.mxu1 }
 0x282   :  { %604 = vst [vmem:[%s1149_s5 + $0x40] sm:$0xff] %v428_v26 }
 0x286   :  { %v476_v14 = vpop.f32.mrf.mxu2 }
 0x287   :  { %620 = vst [vmem:[%s1149_s5 + $0xc0] sm:$0xff] %v476_v14  ;;  %v548_v15 = vpop.f32.mrf.mxu3 }
 0x288   :  { %644 = vst [vmem:[%s1149_s5 + $0x180] sm:$0xff] %v548_v15 }
 0x289   :  { %v431_v29 = vpop.f32.mrf.mxu1 }
 0x28a   :  { %605 = vst [vmem:[%s1149_s5 + $0x48] sm:$0xff] %v431_v29 }
 0x28e   :  { %v479_v17 = vpop.f32.mrf.mxu2 }
 0x28f   :  { %621 = vst [vmem:[%s1149_s5 + $0xc8] sm:$0xff] %v479_v17  ;;  %v551_v18 = vpop.f32.mrf.mxu3 }
 0x290   :  { %645 = vst [vmem:[%s1149_s5 + $0x188] sm:$0xff] %v551_v18 }
 0x291   :  { %v434_v32 = vpop.f32.mrf.mxu1 }
 0x292   :  { %606 = vst [vmem:[%s1149_s5 + $0x50] sm:$0xff] %v434_v32 }
 0x296   :  { %v482_v20 = vpop.f32.mrf.mxu2 }
 0x297   :  { %622 = vst [vmem:[%s1149_s5 + $0xd0] sm:$0xff] %v482_v20  ;;  %v554_v21 = vpop.f32.mrf.mxu3 }
 0x298   :  { %646 = vst [vmem:[%s1149_s5 + $0x190] sm:$0xff] %v554_v21 }
 0x299   :  { %v437_v35 = vpop.f32.mrf.mxu1 }
 0x29a   :  { %607 = vst [vmem:[%s1149_s5 + $0x58] sm:$0xff] %v437_v35 }
 0x29e   :  { %v485_v23 = vpop.f32.mrf.mxu2 }
 0x29f   :  { %623 = vst [vmem:[%s1149_s5 + $0xd8] sm:$0xff] %v485_v23  ;;  %v557_v24 = vpop.f32.mrf.mxu3 }
 0x2a0   :  { %647 = vst [vmem:[%s1149_s5 + $0x198] sm:$0xff] %v557_v24 }
 0x2a1   :  { %v440_v38 = vpop.f32.mrf.mxu1 }
 0x2a2   :  { %608 = vst [vmem:[%s1149_s5 + $0x60] sm:$0xff] %v440_v38 }
 0x2a6   :  { %v488_v25 = vpop.f32.mrf.mxu2 }
 0x2a7   :  { %624 = vst [vmem:[%s1149_s5 + $0xe0] sm:$0xff] %v488_v25  ;;  %v560_v27 = vpop.f32.mrf.mxu3 }
 0x2a8   :  { %648 = vst [vmem:[%s1149_s5 + $0x1a0] sm:$0xff] %v560_v27 }
 0x2a9   :  { %v443_v42 = vpop.f32.mrf.mxu1 }
 0x2aa   :  { %609 = vst [vmem:[%s1149_s5 + $0x68] sm:$0xff] %v443_v42 }
 0x2ae   :  { %v491_v28 = vpop.f32.mrf.mxu2 }
 0x2af   :  { %625 = vst [vmem:[%s1149_s5 + $0xe8] sm:$0xff] %v491_v28  ;;  %v563_v30 = vpop.f32.mrf.mxu3 }
 0x2b0   :  { %649 = vst [vmem:[%s1149_s5 + $0x1a8] sm:$0xff] %v563_v30 }
 0x2b1   :  { %v446_v45 = vpop.f32.mrf.mxu1 }
 0x2b2   :  { %610 = vst [vmem:[%s1149_s5 + $0x70] sm:$0xff] %v446_v45 }
 0x2b6   :  { %v494_v31 = vpop.f32.mrf.mxu2 }
 0x2b7   :  { %626 = vst [vmem:[%s1149_s5 + $0xf0] sm:$0xff] %v494_v31  ;;  %v566_v33 = vpop.f32.mrf.mxu3 }
 0x2b8   :  { %650 = vst [vmem:[%s1149_s5 + $0x1b0] sm:$0xff] %v566_v33 }
 0x2b9   :  { %v449_v48 = vpop.f32.mrf.mxu1 }
 0x2ba   :  { %611 = vst [vmem:[%s1149_s5 + $0x78] sm:$0xff] %v449_v48 }
 0x2be   :  { %v497_v34 = vpop.f32.mrf.mxu2 }
 0x2bf   :  { %627 = vst [vmem:[%s1149_s5 + $0xf8] sm:$0xff] %v497_v34  ;;  %v569_v36 = vpop.f32.mrf.mxu3 }
 0x2c0   :  { %651 = vst [vmem:[%s1149_s5 + $0x1b8] sm:$0xff] %v569_v36 }
 0x2c6   :  { %v500_v37 = vpop.f32.mrf.mxu2 }
 0x2c7   :  { %628 = vst [vmem:[%s1149_s5 + $0x100] sm:$0xff] %v500_v37  ;;  %v572_v39 = vpop.f32.mrf.mxu3 }
 0x2c8   :  { %652 = vst [vmem:[%s1149_s5 + $0x1c0] sm:$0xff] %v572_v39 }
 0x2ce   :  { %v503_v41 = vpop.f32.mrf.mxu2 }
 0x2cf   :  { %629 = vst [vmem:[%s1149_s5 + $0x108] sm:$0xff] %v503_v41  ;;  %v575_v43 = vpop.f32.mrf.mxu3 }
 0x2d0   :  { %653 = vst [vmem:[%s1149_s5 + $0x1c8] sm:$0xff] %v575_v43 }
 0x2d6   :  { %v506_v44 = vpop.f32.mrf.mxu2 }
 0x2d7   :  { %630 = vst [vmem:[%s1149_s5 + $0x110] sm:$0xff] %v506_v44  ;;  %v578_v46 = vpop.f32.mrf.mxu3 }
 0x2d8   :  { %654 = vst [vmem:[%s1149_s5 + $0x1d0] sm:$0xff] %v578_v46 }
 0x2de   :  { %v509_v47 = vpop.f32.mrf.mxu2 }
 0x2df   :  { %631 = vst [vmem:[%s1149_s5 + $0x118] sm:$0xff] %v509_v47  ;;  %v581_v49 = vpop.f32.mrf.mxu3 }
 0x2e0   :  { %655 = vst [vmem:[%s1149_s5 + $0x1d8] sm:$0xff] %v581_v49 }
 0x2e6   :  { %v512_v50 = vpop.f32.mrf.mxu2 }
 0x2e7   :  { %632 = vst [vmem:[%s1149_s5 + $0x120] sm:$0xff] %v512_v50  ;;  %v584_v51 = vpop.f32.mrf.mxu3 }
 0x2e8   :  { %656 = vst [vmem:[%s1149_s5 + $0x1e0] sm:$0xff] %v584_v51 }
 0x2ee   :  { %v515_v52 = vpop.f32.mrf.mxu2 }
 0x2ef   :  { %633 = vst [vmem:[%s1149_s5 + $0x128] sm:$0xff] %v515_v52  ;;  %v587_v53 = vpop.f32.mrf.mxu3 }
 0x2f0   :  { %657 = vst [vmem:[%s1149_s5 + $0x1e8] sm:$0xff] %v587_v53 }
 0x2f6   :  { %v518_v54 = vpop.f32.mrf.mxu2 }
 0x2f7   :  { %634 = vst [vmem:[%s1149_s5 + $0x130] sm:$0xff] %v518_v54  ;;  %v590_v55 = vpop.f32.mrf.mxu3 }
 0x2f8   :  { %658 = vst [vmem:[%s1149_s5 + $0x1f0] sm:$0xff] %v590_v55 }
 0x2fe   :  { %v521_v40 = vpop.f32.mrf.mxu2 }
 0x2ff   :  { %635 = vst [vmem:[%s1149_s5 + $0x138] sm:$0xff] %v521_v40  ;;  %v593_v56 = vpop.f32.mrf.mxu3 }
 0x300   :  { %659 = vst [vmem:[%s1149_s5 + $0x1f8] sm:$0xff] %v593_v56 }
 0x301   :  { %664 = vsyncpa [#allocation3], 1 }
 0x302   :  { %665 = vsyncpa [#allocation5], 1 }

</bundles_post_ra>
